<compile_context>
chip_gen: v6e
topology: v6e:2x2x1
jax: 0.10.0
libtpu: 0.0.40
codegen_flags: <defaults>
</compile_context>

<pallas_src>
import numpy as np
import jax
import jax.numpy as jnp
from jax.experimental import pallas as pl
from jax.experimental.pallas import tpu as pltpu

# ----------------------------------------------------------------------------
# Constants from models/wespe_model.py
# ----------------------------------------------------------------------------
KSIZE = 11   # Gaussian kernel size (size=11, std=3)
PAD = 5      # padding=5 -> "same" output
STD = 3.0

_IMAGENET_MEAN = (0.485, 0.456, 0.406)   # ContentLoss.mean
_IMAGENET_STD = (0.229, 0.224, 0.225)    # ContentLoss.std


def _gaussian_1d(size: int = KSIZE, std: float = STD) -> np.ndarray:
    n = np.arange(size, dtype=np.float64) - (size - 1) / 2.0
    g = np.exp(-0.5 * (n / std) ** 2)
    return g / g.sum()


_G1D_NP = _gaussian_1d()


def _banded_toeplitz(n: int) -> np.ndarray:
    """(n, n) banded Toeplitz: T[i, j] = g[j - i + PAD] for |i - j| <= PAD, else 0.

    The zero band encodes the zero 'same' padding exactly, so the blur needs no
    padded scratch buffer: columns blur via x @ T, rows via T @ x.
    """
    idx = np.arange(n)
    d = idx[None, :] - idx[:, None]                      # j - i
    taps = _G1D_NP[np.clip(d + PAD, 0, KSIZE - 1)]
    return np.where(np.abs(d) <= PAD, taps, 0.0).astype(np.float32)


# ----------------------------------------------------------------------------
# Kernel 1: depthwise 11x11 Gaussian blur (separable; both passes on the MXU)
# ----------------------------------------------------------------------------
def _blur_kernel(x_ref, th_ref, tw_ref, o_ref):
    """One (H, W) image plane per grid step.

    x_ref  : (1, 1, H, W) input plane
    th_ref : (H, H) vertical banded-Toeplitz matrix (same block every step -> resident)
    tw_ref : (W, W) horizontal banded-Toeplitz matrix (resident)
    o_ref  : (1, 1, H, W) blurred output plane
    """
    x = x_ref[0, 0, :, :].astype(jnp.float32)                              # (H, W)
    # Horizontal "same" pass: lane-axis contraction on the MXU.
    tmp = jnp.dot(x, tw_ref[...], preferred_element_type=jnp.float32)      # (H, W)
    # Vertical "same" pass: sublane-axis contraction on the MXU.
    out = jnp.dot(th_ref[...], tmp, preferred_element_type=jnp.float32)    # (H, W)
    o_ref[0, 0, :, :] = out.astype(o_ref.dtype)


def gaussian_blur(x: jax.Array) -> jax.Array:
    """Depthwise 11x11 Gaussian blur with zero 'same' padding, x: (B, C, H, W)."""
    B, C, H, W = x.shape
    t_h = jnp.asarray(_banded_toeplitz(H))
    t_w = jnp.asarray(_banded_toeplitz(W))

    # Cover double-buffered I/O planes + the two resident Toeplitz matrices,
    # with headroom; clamp to v7x's 64 MiB physical VMEM.
    plane_bytes = H * W * 4
    t_bytes = (H * H + W * W) * 4
    vmem_limit = int(min(64 << 20, max(16 << 20, 6 * plane_bytes + 2 * t_bytes + (4 << 20))))

    # TODO(synk): for very large planes (H or W in the thousands) tile H into row
    # bands with (TH x (TH + 2*PAD)) windowed Toeplitz blocks and pad W toward a
    # multiple of 128 (256 on v6e/v7x) so the matmul tiles are lane-dense and
    # MXU-native; not needed at WESPE-patch / demo sizes.
    return pl.pallas_call(
        _blur_kernel,
        out_shape=jax.ShapeDtypeStruct((B, C, H, W), x.dtype),
        grid=(B, C),
        in_specs=[
            pl.BlockSpec((1, 1, H, W), lambda b, c: (b, c, 0, 0)),
            pl.BlockSpec((H, H), lambda b, c: (0, 0)),
            pl.BlockSpec((W, W), lambda b, c: (0, 0)),
        ],
        out_specs=pl.BlockSpec((1, 1, H, W), lambda b, c: (b, c, 0, 0)),
        compiler_params=pltpu.CompilerParams(
            dimension_semantics=("parallel", "parallel"),
            vmem_limit_bytes=vmem_limit,
        ),
    )(x, t_h, t_w)


# ----------------------------------------------------------------------------
# Kernel 2: ContentLoss forward (normalization + squared-error reduction)
# ----------------------------------------------------------------------------
def _content_mse_kernel(x_ref, y_ref, o_ref):
    """((fx - fy)**2).sum() / (b*c*h*w), fx/fy = ImageNet-normalized inputs.

    x_ref, y_ref : (B, 3, H, W) in VMEM
    o_ref        : (1, 1) scalar output in SMEM
    """
    B, C, H, W = x_ref.shape
    d2 = None
    for c in range(C):   # per-channel mean/std baked in as Python-float immediates
        inv_std = 1.0 / _IMAGENET_STD[c]
        xn = (x_ref[:, c, :, :].astype(jnp.float32) - _IMAGENET_MEAN[c]) * inv_std
        yn = (y_ref[:, c, :, :].astype(jnp.float32) - _IMAGENET_MEAN[c]) * inv_std
        # TODO(synk): the pretrained VGG19 feature extractor
        # (vgg19(pretrained=True).features[:-1]) cannot be reproduced in-script;
        # identity features are used, so the loss is on the normalized images.
        d = xn - yn
        d2 = d * d if d2 is None else d2 + d * d
    o_ref[0, 0] = jnp.sum(d2) * (1.0 / float(B * C * H * W))


def content_loss(x: jax.Array, y: jax.Array) -> jax.Array:
    """ContentLoss.forward(x, y) -> scalar.  x, y: (B, 3, H, W) RGB in [0, 1]."""
    # TODO(synk): for full-size feature maps, grid over (B,) with an SMEM
    # accumulator initialized under @pl.when(pl.program_id(0) == 0).
    out = pl.pallas_call(
        _content_mse_kernel,
        out_shape=jax.ShapeDtypeStruct((1, 1), jnp.float32),
        in_specs=[
            pl.BlockSpec(memory_space=pltpu.MemorySpace.VMEM),
            pl.BlockSpec(memory_space=pltpu.MemorySpace.VMEM),
        ],
        out_specs=pl.BlockSpec(memory_space=pltpu.MemorySpace.SMEM),
    )(x, y)
    return out[0, 0]


# ----------------------------------------------------------------------------
# Pure-numpy (float64) references
# ----------------------------------------------------------------------------
def _blur_reference_np(x) -> np.ndarray:
    x64 = np.asarray(x).astype(np.float64)
    B, C, H, W = x64.shape
    xpad = np.pad(x64, ((0, 0), (0, 0), (PAD, PAD), (PAD, PAD)))
    k2d = np.outer(_G1D_NP, _G1D_NP)
    out = np.zeros_like(x64)
    for i in range(KSIZE):
        for j in range(KSIZE):
            out += k2d[i, j] * xpad[:, :, i:i + H, j:j + W]
    return out


def _content_loss_reference_np(x, y) -> float:
    x64 = np.asarray(x).astype(np.float64)
    y64 = np.asarray(y).astype(np.float64)
    mean = np.asarray(_IMAGENET_MEAN, dtype=np.float64).reshape(1, 3, 1, 1)
    std = np.asarray(_IMAGENET_STD, dtype=np.float64).reshape(1, 3, 1, 1)
    fx = (x64 - mean) / std
    fy = (y64 - mean) / std
    return float(((fx - fy) ** 2).sum() / fx.size)


if __name__ == "__main__":
    B, C, H, W = 2, 3, 16, 16    # RGB images, [b, 3, h, w]

    kx, ky = jax.random.split(jax.random.PRNGKey(0))
    x = jax.random.uniform(kx, (B, C, H, W), dtype=jnp.float32)
    y = jax.random.uniform(ky, (B, C, H, W), dtype=jnp.float32)

    # Gaussian blur kernel (the previously reviewed kernel, now MXU-based).
    blurred = jax.block_until_ready(gaussian_blur(x))
    assert blurred.shape == (B, C, H, W)
    blur_err = np.max(np.abs(np.asarray(blurred).astype(np.float64) - _blur_reference_np(x)))
    # Tolerance covers possible bf16-pass rounding of the f32 MXU matmuls;
    # structural errors (tap/padding misalignment) are far larger at the edges.
    assert blur_err < 1e-2, f"blur mismatch vs reference: max abs err = {blur_err}"

    # ContentLoss forward (normalization + MSE reduction; identity VGG stand-in).
    loss = jax.block_until_ready(content_loss(x, y))
    loss_ref = _content_loss_reference_np(x, y)
    assert abs(float(loss) - loss_ref) < 1e-4 * max(1.0, abs(loss_ref)), \
        f"content loss mismatch: {float(loss)} vs {loss_ref}"

    print("KERNEL_OK")
</pallas_src>

<mosaic_0001>
module attributes {stable_mosaic.version = 11 : i64} {
  func.func @_blur_kernel(%arg0: i32, %arg1: i32, %arg2: memref<1x1x16x16xf32, #tpu.memory_space<vmem>>, %arg3: memref<16x16xf32, #tpu.memory_space<vmem>>, %arg4: memref<16x16xf32, #tpu.memory_space<vmem>>, %arg5: memref<1x1x16x16xf32, #tpu.memory_space<vmem>>) attributes {dimension_semantics = [#tpu.dimension_semantics<parallel>, #tpu.dimension_semantics<parallel>], iteration_bounds = array<i64: 2, 3>, scalar_prefetch = 0 : i64, scratch_operands = 0 : i64, tpu.core_type = #tpu.core_type<tc>, window_params = [{transform_indices = @transform_0, window_bounds = array<i64: 1, 1, 16, 16>}, {pipeline_mode = #tpu.pipeline_mode<synchronous>, transform_indices = @transform_1, window_bounds = array<i64: 16, 16>}, {pipeline_mode = #tpu.pipeline_mode<synchronous>, transform_indices = @transform_2, window_bounds = array<i64: 16, 16>}, {transform_indices = @transform_3, window_bounds = array<i64: 1, 1, 16, 16>}]} {
    %c0 = arith.constant 0 : index
    %c0_0 = arith.constant 0 : index
    %c0_1 = arith.constant 0 : index
    %c0_2 = arith.constant 0 : index
    %0 = vector.load %arg2[%c0, %c0_0, %c0_1, %c0_2] : memref<1x1x16x16xf32, #tpu.memory_space<vmem>>, vector<1x1x16x16xf32>
    %1 = vector.shape_cast %0 : vector<1x1x16x16xf32> to vector<16x16xf32>
    %c0_3 = arith.constant 0 : index
    %c0_4 = arith.constant 0 : index
    %2 = vector.load %arg4[%c0_3, %c0_4] : memref<16x16xf32, #tpu.memory_space<vmem>>, vector<16x16xf32>
    %cst = arith.constant dense<0.000000e+00> : vector<16x16xf32>
    %3 = tpu.matmul %1, %2, %cst {dimension_numbers = #tpu.dot_dimension_numbers<[1], [0], [0], [1], [0, 0, 1, 1], [], []>} : vector<16x16xf32>, vector<16x16xf32>, vector<16x16xf32> -> vector<16x16xf32>
    %c0_5 = arith.constant 0 : index
    %c0_6 = arith.constant 0 : index
    %4 = vector.load %arg3[%c0_5, %c0_6] : memref<16x16xf32, #tpu.memory_space<vmem>>, vector<16x16xf32>
    %cst_7 = arith.constant dense<0.000000e+00> : vector<16x16xf32>
    %5 = tpu.matmul %4, %3, %cst_7 {dimension_numbers = #tpu.dot_dimension_numbers<[1], [0], [0], [1], [0, 0, 1, 1], [], []>} : vector<16x16xf32>, vector<16x16xf32>, vector<16x16xf32> -> vector<16x16xf32>
    %c0_8 = arith.constant 0 : index
    %c0_9 = arith.constant 0 : index
    %c0_10 = arith.constant 0 : index
    %c0_11 = arith.constant 0 : index
    %6 = vector.load %arg5[%c0_8, %c0_9, %c0_10, %c0_11] : memref<1x1x16x16xf32, #tpu.memory_space<vmem>>, vector<1x1x16x16xf32>
    %7 = vector.shape_cast %6 : vector<1x1x16x16xf32> to vector<16x16xf32>
    %8 = vector.shape_cast %5 : vector<16x16xf32> to vector<1x1x16x16xf32>
    tpu.vector_store %arg5[%c0_8, %c0_9, %c0_10, %c0_11], %8 {strides = array<i32>} : memref<1x1x16x16xf32, #tpu.memory_space<vmem>>, vector<1x1x16x16xf32>,
    return
  }
  func.func @transform_0(%arg0: i32, %arg1: i32) -> (i32, i32, i32, i32) {
    %c0_i32 = arith.constant 0 : i32
    %c0_i32_0 = arith.constant 0 : i32
    %c0_i32_1 = arith.constant 0 : i32
    return %arg0, %arg1, %c0_i32, %c0_i32_0 : i32, i32, i32, i32
  }
  func.func @transform_1(%arg0: i32, %arg1: i32) -> (i32, i32) {
    %c0_i32 = arith.constant 0 : i32
    %c0_i32_0 = arith.constant 0 : i32
    %c0_i32_1 = arith.constant 0 : i32
    return %c0_i32, %c0_i32_0 : i32, i32
  }
  func.func @transform_2(%arg0: i32, %arg1: i32) -> (i32, i32) {
    %c0_i32 = arith.constant 0 : i32
    %c0_i32_0 = arith.constant 0 : i32
    %c0_i32_1 = arith.constant 0 : i32
    return %c0_i32, %c0_i32_0 : i32, i32
  }
  func.func @transform_3(%arg0: i32, %arg1: i32) -> (i32, i32, i32, i32) {
    %c0_i32 = arith.constant 0 : i32
    %c0_i32_0 = arith.constant 0 : i32
    %c0_i32_1 = arith.constant 0 : i32
    return %arg0, %arg1, %c0_i32, %c0_i32_0 : i32, i32, i32, i32
  }
}

</mosaic_0001>

<bundles_post_ra>
// kernel: tpu_custom_call.1
= control target key start
LH: loop header
LB: loop body
LE: loop exit
PB: predicated region body
PF: predicated region fallthrough
CT: control target
= control target key end

     0   :  { %s1125_s0 = inlined_call_operand.hbm [shape: f32[2,3,16,16], index: 0, kind: input, shape index: {}]   ;;  %s1126_s1 = inlined_call_operand.hbm [shape: f32[16,16], index: 1, kind: input, shape index: {}]   ;;  %s1127_s2 = inlined_call_operand.hbm [shape: f32[16,16], index: 2, kind: input, shape index: {}]   ;;  %s1128_s3 = inlined_call_operand.hbm [shape: f32[2,3,16,16], index: 3, kind: output, shape index: {}]  }
   0x1   :  { %1134 = sst [smem:[#allocation15_spill]] %s1126_s1 }
   0x2   :  { %1135 = sst [smem:[#allocation16_spill]] %s1127_s2 }
   0x3   :  { %8 = vsyncpa [#allocation3], 0 }
   0x4   :  { %10 = vsyncpa [#allocation3 + $0x1], 0 }
   0x5   :  { %11 = vsyncpa [#allocation6], 0 }
   0x6   :  { %12 = vsyncpa [#allocation4], 0 }
   0x7   :  { %14 = vsyncpa [#allocation4 + $0x1], 0  ;;  %s892_s12 = smov 0   ;;  %s894_s13 = smov 0  }
   0x8   :  { %s896_s14 = smov 0   ;;  %s898_s15 = smov 0  }
   0x9   :  { %s900_s16 = smov 0   ;;  %s902_s17 = smov 0  }
   0xa   :  { %s904_s18 = smov 0   ;;  %s906_s19 = smov 0  }
   0xb LB: > { %1136 = sst [smem:[#allocation12_spill]] %s834_s12  ;;  %s532_s20 = sadd.s32 4294967295, %s862_s19   ;;  %s862_s19 = sphi %s906_s19, %s20_s19   ;;  %s858_s18 = sphi %s904_s18, %s1161_s18   ;;  %s854_s17 = sphi %s902_s17, %s1160_s17   ;;  %s850_s16 = sphi %s900_s16, %s1159_s16   ;;  %s846_s15 = sphi %s898_s15, %s1158_s15   ;;  %s842_s14 = sphi %s896_s14, %s1157_s14   ;;  %s838_s13 = sphi %s894_s13, %s1156_s13   ;;  %s834_s12 = sphi %s892_s12, %s1155_s12  }
   0xc   : > { %s533_s21 = sadd.s32 4294967294, %s862_s19   ;;  %p54_p0 = scmp.ne.s32.totalorder %s838_s13, %s834_s12 }
   0xd   : > { %p936_p1 = scmp.eq.s32.totalorder %s532_s20, 0  ;;  %p940_p2 = scmp.eq.s32.totalorder %s532_s20, 5 }
   0xe   : > { %p128_p3 = scmp.eq.s32.totalorder %s533_s21, 5  ;;  %p534_p5 = scmp.ge.s32.totalorder %s862_s19, 1 }
   0xf   : > { %p946_p4 = por %p936_p1, %p54_p0  ;;  %p135_p7 = scmp.lt.s32.totalorder %s862_s19, 7 }
  0x10   : > { %p951_p6 = por %p128_p3, %p54_p0  ;;  %s864_s27 = smov [#allocation5]  }
  0x11   : > { %p956_p8 = pnand %p534_p5, %p135_p7  ;;  %s147_s28 = sshll.u32 %s864_s27, 4  ;;  %s148_s28 = int_to_ptr.vmem [resolvable:$true] %s147_s28 }
  0x12   : > { %s1140_s25 = scalar_select %p951_p6, 1, 0 }
  0x13   : > { %p591_p9 = pneg %p956_p8  ;;  %s865_s30 = smov [#allocation7]  }
  0x14   : > { %1141 = sst [smem:[#allocation13_spill]] %s1140_s25  ;;  %s160_s4 = sshll.u32 %s865_s30, 4  ;;  %s161_s4 = int_to_ptr.vmem [resolvable:$true] %s160_s4 }
  0x15   : > { %p964_p10 = pnand %p591_p9, %p936_p1  ;;  %s693_s5 = scalar_lea.vmem %s148_s28, 256 }
  0x16   : > { %p694_p12 = scmp.ne.s32.totalorder %s148_s28, %s693_s5  ;;  %p701_p3 = scmp.lt.s32.totalorder %s148_s28, %s148_s28 }
  0x17   : > { %p684_p11 = pneg %p964_p10  ;;  %p702_p5 = scmp.lt.s32.totalorder %s693_s5, %s693_s5 }
  0x19   : > { %p696_p13 = pnand %p694_p12, %p684_p11  ;;  %p703_p7 = por %p702_p5, %p701_p3 }
  0x1b   : > { %p697_p0 = pneg %p696_p13 }
  0x1d   : > { %p704_p9 = pnand %p703_p7, %p697_p0 }
  0x1f   : > { %707 = shalt.err (!%p704_p9)
}
  0x20   : > { %s1129_s6 = smov 128   ;;  %s1130_s7 = smov 8  }
  0x21   : > { %s1144_s1 = sld [smem:[#allocation15_spill]]  ;;  %s719_s10 = scalar_lea.vmem %s161_s4, 256 }
  0x22   : > { %p720_p12 = scmp.ne.s32.totalorder %s161_s4, %s719_s10  ;;  %p727_p0 = scmp.lt.s32.totalorder %s161_s4, %s161_s4 }
  0x23   : > { %p728_p5 = scmp.lt.s32.totalorder %s719_s10, %s719_s10 }
  0x24   : > { %p722_p13 = pnand %p720_p12, %p684_p11 }
  0x25   : > { %p729_p7 = por %p728_p5, %p727_p0 }
  0x26   : > { %p723_p3 = pneg %p722_p13 }
  0x27   : > { %594 = dma.hbm_to_vmem [thread:$0]  (!%p964_p10), %s1144_s1, 256, %s148_s28, [#allocation6], %s1129_s6, %s1129_s6, %s1130_s7  }
  0x28   : > { %p730_p9 = pnand %p729_p7, %p723_p3 }
  0x2a   : > { %733 = shalt.err (!%p730_p9)
}
  0x2b   : > { %s1145_s2 = sld [smem:[#allocation16_spill]]  ;;  %s29_s21 = sadd.s32 1, %s854_s17 }
  0x2c   : > { %s32_s27 = sadd.s32 1, %s858_s18  ;;  %p30_p11 = scmp.ge.s32.totalorder %s29_s21, 3 }
  0x2d   : > { %s41_s28 = sadd.s32 1, %s842_s14  ;;  %p48_p12 = scmp.ne.s32.totalorder %s842_s14, %s838_s13 }
  0x2e   : > { %p49_p13 = scmp.eq.s32.totalorder %s862_s19, 0  ;;  %s1163_s21 = smov (%p30_p11, %s29_s21), 0 }
  0x2f   : > { %1146 = sst [smem:[#allocation14_spill]] %s1163_s21  ;;  %s1165_s27 = smov (!%p30_p11, %s32_s27), %s858_s18 }
  0x30   : > { %s37_s29 = ssub.s32 %s854_s17, %s1163_s21  ;;  %p1003_p3 = por %p49_p13, %p48_p12 }
  0x31   : > { %597 = dma.hbm_to_vmem [thread:$0]  (!%p964_p10), %s1145_s2, 256, %s161_s4, [#allocation6], %s1129_s6, %s1129_s6, %s1130_s7  }
  0x32   : > { %p34_p10 = scmp.ge.s32.totalorder %s1165_s27, 2  ;;  %p1009_p0 = por %p940_p2, %p48_p12 }
  0x33   : > { %p608_p5 = scmp.lt.s32.totalorder %s862_s19, 6  ;;  %s174_s5 = sand.u32 1, %s842_s14  }
  0x34   : > { %s1167_s27 = smov (%p34_p10, %s1165_s27), 0  ;;  %s538_s8 = sshll.u32 %s174_s5, 4 }
  0x35   : > { %s36_s9 = ssub.s32 %s858_s18, %s1167_s27  ;;  %s539_s11 = sshll.u32 %s854_s17, 1 }
  0x36   : > { %s38_s10 = sor.u32 %s37_s29, %s36_s9  ;;  %s577_s20 = smul.u32 6, %s858_s18 }
  0x37   : > { %p39_p7 = scmp.eq.s32.totalorder %s38_s10, 0  ;;  %s178_s6 = scalar_lea.vmem [#allocation2], %s538_s8 }
  0x38   : > { %s187_s7 = sshll.u32 %s178_s6, 4  ;;  %p1023_p9 = pnand %p608_p5, %p1003_p3  ;;  %s188_s7 = int_to_ptr.vmem [resolvable:$true] %s187_s7 }
  0x39   : > { %s1028_s1 = scalar_select %p39_p7, %s842_s14, %s41_s28  }
  0x3a   : > { %s184_s2 = sadd.s32 %s577_s20, %s539_s11  ;;  %s175_s9 = scalar_lea.sflag [#allocation3], %s174_s5 }
  0x3b   : > { %s540_s21 = sshll.u32 %s184_s2, 7  ;;  %p736_p2 = pneg %p1023_p9 }
  0x3c   : > { %s186_s29 = scalar_lea.hbm %s1125_s0, %s540_s21  ;;  %s747_s8 = scalar_lea.vmem %s188_s7, 256 }
  0x3d   : > { %p748_p11 = scmp.ne.s32.totalorder %s188_s7, %s747_s8  ;;  %s868_s6 = smov [#allocation2]  }
  0x3e   : > { %s752_s30 = sshll.u32 %s868_s6, 4  ;;  %s753_s30 = int_to_ptr.vmem [resolvable:$false] %s752_s30 }
  0x3f   : > { %p750_p12 = pnand %p748_p11, %p736_p2  ;;  %s754_s10 = scalar_lea.vmem %s753_s30, 512 }
  0x40   : > { %p755_p3 = scmp.lt.s32.totalorder %s188_s7, %s753_s30  ;;  %p756_p10 = scmp.lt.s32.totalorder %s754_s10, %s747_s8 }
  0x41   : > { %p751_p13 = pneg %p750_p12 }
  0x42   : > { %p757_p5 = por %p756_p10, %p755_p3 }
  0x44   : > { %p758_p7 = pnand %p757_p5, %p751_p13 }
  0x46   : > { %761 = shalt.err (!%p758_p7)
}
  0x47   : > { %s1150_s2 = smov 8   ;;  %s1151_s12 = smov 128  }
  0x48   : > { %601 = dma.hbm_to_vmem [thread:$0]  (!%p1023_p9), %s186_s29, 256, %s188_s7, %s175_s9, %s1151_s12, %s1151_s12, %s1150_s2  }
  0x49   : > { %199 = sbr.rel (%p956_p8) target bundleno = 492 (0x1ec), region = 32  ;;  %s1043_s25 = sand.u32 (!%p956_p8), 1, %s838_s13  }
  0x4a   : > { %s542_s21 = sshll.u32 (!%p956_p8), %s1043_s25, 4  ;;  %s202_s28 = scalar_lea.sflag (!%p956_p8), [#allocation3], %s1043_s25 }
  0x4b   : > { %s205_s5 = scalar_lea.vmem (!%p956_p8), [#allocation2], %s542_s21 }
  0x4e   : > { %821 = dma.done.wait (%p946_p4), %s202_s28, 256  }
  0x4f   : > { %823 = vsyncadd (%p946_p4), %s202_s28, 4294967040 }
  0x50   : > { %825 = dma.done.wait (%p936_p1), [#allocation6], 512  }
  0x51   : > { %827 = vsyncadd (%p936_p1), [#allocation6], 4294966784  ;;  %vm240_vm0 = vcmask 130048   ;;  %v239_v0 = vld [vmem:[#allocation7 + $0x8] sm:$0xff]  ;;  %v238_v1 = vld [vmem:[#allocation7] sm:$0xff]  ;;  %s578_s22 = smul.u32 6, %s850_s16 }
  0x52   : > { %v236_v2 = vld [vmem:[%s205_s5] sm:$0xff]  ;;  %563 = vmatprep.subr.mxu0 %v239_v0  ;;  %v237_v3 = vld [vmem:[%s205_s5 + $0x8] sm:$0xff]  ;;  %s551_s24 = sshll.u32 %s846_s15, 1  ;;  %s235_s7 = scalar_lea.vmem [#allocation8], %s542_s21 }
  0x53   : > { %567 = vmatprep.mubr.msk.f32.mxu0 %vm240_vm0, %v236_v2  ;;  %564 = vmatpush3.msra.mxu0 %v239_v0  ;;  %v322_v4 = vld [vmem:[#allocation5] sm:$0xff]  ;;  %v323_v7 = vld [vmem:[#allocation5 + $0x8] sm:$0xff]  ;;  %s420_s26 = sadd.s32 %s578_s22, %s551_s24  ;;  %s423_s11 = sshll.u32 %s235_s7, 4  ;;  %s1065_s11 = int_to_ptr.vmem [resolvable:$true] %s423_s11 }
  0x54   : > { %565 = vmatprep.subr.mxu0 %v238_v1  ;;  %574 = vmatprep.mubr.msk.f32.mxu1 %vm240_vm0, %v322_v4  ;;  %s552_s20 = sshll.u32 %s420_s26, 7  ;;  %s408_s15 = scalar_lea.sflag [#allocation4], %s1043_s25 }
  0x55   : > { %566 = vmatpush3.msra.mxu0 %v238_v1  ;;  %s1070_s9 = scalar_lea.hbm %s1128_s3, %s552_s20  ;;  %s762_s16 = scalar_lea.vmem %s1065_s11, 256 }
  0x56   : > { %568 = vmatmul.mubr.msk.f32.vlgmr.msra.gmra.mxu0 %vm240_vm0, %v237_v3  ;;  %p763_p1 = scmp.ne.s32.totalorder %s1065_s11, %s762_s16  ;;  %s869_s8 = smov [#allocation8]  }
  0x57   : > { %s766_s6 = sshll.u32 %s869_s8, 4  ;;  %s767_s6 = int_to_ptr.vmem [resolvable:$false] %s766_s6 }
  0x58   : > { %p764_p4 = pnand %p763_p1, %p1009_p0  ;;  %s768_s30 = scalar_lea.vmem %s767_s6, 512 }
  0x59   : > { %p769_p9 = scmp.lt.s32.totalorder %s1065_s11, %s767_s6  ;;  %p770_p2 = scmp.lt.s32.totalorder %s768_s30, %s762_s16 }
  0x5a   : > { %p765_p8 = pneg %p764_p4 }
  0x5b   : > { %p771_p11 = por %p770_p2, %p769_p9 }
  0x5d   : > { %p772_p12 = pnand %p771_p11, %p765_p8 }
 0x116   : > { %v569_v5 = vpop.f32.mrf.mxu0 }
 0x117   : > { %570 = vmatprep.subr.mxu1 %v569_v5 }
 0x118   : > { %v313_v6 = vpop.f32.mrf.mxu0  ;;  %571 = vmatpush3.msra.mxu1 %v569_v5 }
 0x119   : > { %572 = vmatprep.subr.mxu1 %v313_v6 }
 0x11a   : > { %573 = vmatpush3.msra.mxu1 %v313_v6 }
 0x11b   : > { %575 = vmatmul.mubr.msk.f32.vlgmr.msra.gmra.mxu1 %vm240_vm0, %v323_v7 }
 0x1db   : > { %v576_v8 = vpop.f32.mrf.mxu1 }
 0x1dc   : > { %406 = vst.msk [vmem:[%s235_s7 + $0x8] sm:$0xff] %vm240_vm0, %v576_v8 }
 0x1dd   : > { %v396_v9 = vpop.f32.mrf.mxu1 }
 0x1de   : > { %405 = vst.msk [vmem:[%s235_s7] sm:$0xff] %vm240_vm0, %v396_v9 }
 0x1df   : > { %775 = shalt.err (!%p772_p12)
}
 0x1e0   : > { %s776_s10 = scalar_lea.hbm %s1070_s9, 256  ;;  %s780_s21 = scalar_lea.hbm %s1128_s3, 1536 }
 0x1e1   : > { %p777_p13 = scmp.ne.s32.totalorder %s1070_s9, %s776_s10  ;;  %p781_p5 = scmp.lt.s32.totalorder %s1070_s9, %s1128_s3 }
 0x1e2   : > { %p782_p7 = scmp.lt.s32.totalorder %s780_s21, %s776_s10 }
 0x1e3   : > { %p778_p3 = pnand %p777_p13, %p1009_p0 }
 0x1e4   : > { %p783_p1 = por %p782_p7, %p781_p5 }
 0x1e5   : > { %p779_p10 = pneg %p778_p3 }
 0x1e7   : > { %p784_p4 = pnand %p783_p1, %p779_p10 }
 0x1e9   : > { %787 = shalt.err (!%p784_p4)
}
 0x1ea   : > { %s870_s22 = smov 128   ;;  %s871_s24 = smov 8  }
 0x1eb   : > { %589 = dma.vmem_to_hbm [thread:$0]  (%p1009_p0), %s1065_s11, 256, %s1070_s9, %s408_s15, %s870_s22, %s870_s22, %s871_s24  }
 0x1ec PF: > { %s1152_s26 = sld [smem:[#allocation12_spill]]  ;;  %p611_p8 = scmp.ge.s32.totalorder %s862_s19, 2 }
 0x1ee   : > { %p603_p9 = pnand %p611_p8, %p951_p6 }
 0x1f0   : > { %p604_p2 = pneg %p603_p9 }
 0x1f2   : > { %s438_s20 = sand.u32 1, %s1152_s26  }
 0x1f3   : > { %s439_s23 = scalar_lea.sflag [#allocation4], %s438_s20 }
 0x1f4   : > { %829 = dma.done.wait (%p604_p2), %s439_s23, 256  }
 0x1f5   : > { %831 = vsyncadd (%p604_p2), %s439_s23, 4294967040  ;;  %s20_s19 = sadd.s32 1, %s862_s19   ;;  %s1154_s4 = sld [smem:[#allocation14_spill]] }
 0x1f6   : > { %p17_p11 = scmp.ge.s32.totalorder %s20_s19, 8   ;;  %s1155_s12 = smov %s838_s13 }
 0x1f7   : > { %s1156_s13 = smov %s842_s14  ;;  %s1157_s14 = smov %s1028_s1 }
 0x1f8   : > { %s1158_s15 = smov %s854_s17  ;;  %s1159_s16 = smov %s858_s18 }
 0x1f9   : > { %s1161_s18 = smov %s1167_s27  ;;  %19 = sbr.rel (!%p17_p11) target bundleno = 11 (0xb), region = 85 }
 0x1fb   : > { %s1160_s17 = smov %s1154_s4 }
 0x1fe   :  { %444 = vsyncpa [#allocation3], 1 }
 0x1ff   :  { %446 = vsyncpa [#allocation3 + $0x1], 1 }
 0x200   :  { %447 = vsyncpa [#allocation6], 1 }
 0x201   :  { %448 = vsyncpa [#allocation4], 1 }
 0x202   :  { %450 = vsyncpa [#allocation4 + $0x1], 1 }

</bundles_post_ra>
